<compile_context>
chip_gen: v7x
topology: tpu7x:2x2x1
jax: 0.10.0
libtpu: 0.0.40
codegen_flags: <defaults>
</compile_context>

<pallas_src>
import math

import jax
import jax.numpy as jnp
from jax.experimental import pallas as pl
from jax.experimental.pallas import tpu as pltpu


def _round_up(n, m):
    return ((n + m - 1) // m) * m


def simple_nn_kernel(xT_ref, w1t_ref, b1_ref, w23_ref, b23_ref, o_ref):
    """Feature-major: relu(W1^T @ x^T + b1) then folded 64->1 tail, (1, tb) out."""
    # Layer 1: Linear(input_size -> 64) + ReLU, batch on the lane axis.
    # (Dropout(0.0) == identity, batch_norm=False.)
    h1 = jnp.dot(w1t_ref[...], xT_ref[...], preferred_element_type=jnp.float32)
    h1 = jnp.maximum(h1 + b1_ref[...], 0.0)                     # (hidden1, tb)

    # Folded Linear(64 -> 32) -> Linear(32 -> 1) tail: w23_ref is (hidden1, 1).
    # VPU lane-broadcast multiply + sublane reduce -> lane-dense (1, tb) row.
    out = jnp.sum(h1 * w23_ref[...], axis=0, keepdims=True) + b23_ref[...]
    o_ref[...] = out.astype(o_ref.dtype)                        # unmasked vst


def simple_nn_forward(x, params, *, block_batch=8192):
    """Batch-tiled pallas_call wrapper; weights resident across the grid."""
    w1, b1, w2, b2, w3, b3 = params
    batch, in_features = x.shape
    hidden1 = w1.shape[1]
    out_size = w3.shape[1]
    # Kernel tail is specialised to the module default output_size == 1.
    # (For output_size > 1 the tail would use an MXU matmul instead.)
    assert out_size == 1, "kernel specialised to default output_size=1"

    # Fold the nonlinearity-free tail: Linear(64->32) -> Linear(32->1).
    w23 = w2 @ w3                          # (hidden1, 1): column for sublane reduce
    b23 = b2 @ w3 + b3                     # (1, 1)
    b1_col = b1.reshape(hidden1, 1)        # bias broadcast along lanes
    w1t = w1.T                             # (hidden1, in_features)

    # Pad the feature (sublane) axis of x^T / W1^T to a multiple of 8.
    in_f_pad = max(8, _round_up(in_features, 8))
    if in_f_pad != in_features:
        w1t = jnp.pad(w1t, ((0, 0), (0, in_f_pad - in_features)))

    # Batch tile: multiple of 128 (lane width).  Keep it large to amortize the
    # ~0.35us/step pipeline overhead, but keep >= 2 grid steps when the batch
    # allows it so v7x can shard the parallel axis across its 2 TensorCores.
    tb = min(block_batch, _round_up(batch, 128))
    tb = max(128, _round_up(tb, 128))
    half = _round_up((batch + 1) // 2, 128)
    if batch > 128 and tb > half:
        tb = half
    padded = _round_up(batch, tb)
    grid = (padded // tb,)

    # Build the feature-major, padded x^T : (in_f_pad, padded).
    xT = jnp.pad(x, ((0, padded - batch), (0, in_f_pad - in_features))).T

    def resident(a):  # full-array block, same tile for every grid step
        zeros = (0,) * a.ndim
        return pl.BlockSpec(a.shape, lambda i: zeros)

    # VMEM budget: double-buffered x^T tiles + (hidden1, tb) h1 intermediate
    # + double-buffered (1, tb) out rows + resident weights.  Capped at the
    # 32 MiB scoped default, which keeps v7x (64 MiB physical) comfortable.
    vmem_bytes = 4 * (2 * in_f_pad * tb                 # double-buffered x^T tiles
                      + 2 * tb                          # double-buffered out rows
                      + 3 * hidden1 * tb                # h1 + temporaries
                      + hidden1 * in_f_pad + 2 * hidden1 + 1)
    vmem_limit = int(min(max(2 * vmem_bytes, 8 << 20), 32 << 20))

    flops = 2 * padded * (in_features * hidden1 + hidden1 * out_size)
    bytes_accessed = 4 * (padded * in_f_pad + padded * out_size
                          + hidden1 * in_f_pad + 2 * hidden1 + out_size)

    out = pl.pallas_call(
        simple_nn_kernel,
        out_shape=jax.ShapeDtypeStruct((1, padded), jnp.float32),
        grid=grid,
        in_specs=[
            pl.BlockSpec((in_f_pad, tb), lambda i: (0, i)),   # x^T batch tile
            resident(w1t), resident(b1_col), resident(w23), resident(b23),
        ],
        out_specs=pl.BlockSpec((1, tb), lambda i: (0, i)),    # lane-dense store
        compiler_params=pltpu.CompilerParams(
            dimension_semantics=("parallel",),
            vmem_limit_bytes=vmem_limit),
        cost_estimate=pl.CostEstimate(
            flops=flops, transcendentals=0, bytes_accessed=bytes_accessed),
    )(xT, w1t, b1_col, w23, b23)

    out = out.reshape(padded, 1)
    return out[:batch] if padded != batch else out


def init_params(key, input_size, hidden_sizes, output_size):
    """Kaiming-normal (fan_in, relu) weights, zero biases — matches
    SimpleNN._initialize_weights for activation='relu'."""
    sizes = [input_size] + list(hidden_sizes) + [output_size]
    params = []
    for fan_in, fan_out in zip(sizes[:-1], sizes[1:]):
        key, sub = jax.random.split(key)
        std = math.sqrt(2.0 / fan_in)  # kaiming_normal_, mode='fan_in', relu
        w = (std * jax.random.normal(sub, (fan_in, fan_out))).astype(jnp.float32)
        b = jnp.zeros((1, fan_out), dtype=jnp.float32)
        params.extend([w, b])
    return tuple(params)


def reference_forward(x, params):
    """Pure-JAX reference matching the original (unfolded) module graph."""
    w1, b1, w2, b2, w3, b3 = params
    h1 = jnp.maximum(x @ w1 + b1, 0.0)
    h2 = h1 @ w2 + b2
    return h2 @ w3 + b3


if __name__ == "__main__":
    # Small shapes consistent with the module forward: x is (batch, input_size).
    # Ragged batch (200) exercises padding and yields a 2-step grid
    # (tb capped at half the 128-rounded batch -> tb=128, padded=256).
    batch, input_size = 200, 16
    hidden_sizes = [64, 32]
    output_size = 1

    key = jax.random.PRNGKey(0)
    key, xkey = jax.random.split(key)
    x = jax.random.normal(xkey, (batch, input_size), dtype=jnp.float32)

    params = init_params(key, input_size, hidden_sizes, output_size)

    out = simple_nn_forward(x, params)
    out = jax.block_until_ready(out)

    ref = reference_forward(x, params)
    assert out.shape == (batch, output_size), out.shape
    # Folded 64->32->1 tail reorders f32 ops, so tolerance is slightly looser.
    assert jnp.allclose(out, ref, atol=1e-4, rtol=1e-4), "mismatch vs reference"

    print("KERNEL_OK")
</pallas_src>

<mosaic_0001>
module attributes {stable_mosaic.version = 11 : i64} {
  func.func @simple_nn_kernel(%arg0: i32, %arg1: memref<16x128xf32, #tpu.memory_space<vmem>>, %arg2: memref<64x16xf32, #tpu.memory_space<vmem>>, %arg3: memref<64x1xf32, #tpu.memory_space<vmem>>, %arg4: memref<64x1xf32, #tpu.memory_space<vmem>>, %arg5: memref<1x1xf32, #tpu.memory_space<vmem>>, %arg6: memref<1x128xf32, #tpu.memory_space<vmem>>) attributes {dimension_semantics = [#tpu.dimension_semantics<parallel>], iteration_bounds = array<i64: 2>, scalar_prefetch = 0 : i64, scratch_operands = 0 : i64, tpu.core_type = #tpu.core_type<tc>, window_params = [{transform_indices = @transform_0, window_bounds = array<i64: 16, 128>}, {pipeline_mode = #tpu.pipeline_mode<synchronous>, transform_indices = @transform_1, window_bounds = array<i64: 64, 16>}, {pipeline_mode = #tpu.pipeline_mode<synchronous>, transform_indices = @transform_2, window_bounds = array<i64: 64, 1>}, {pipeline_mode = #tpu.pipeline_mode<synchronous>, transform_indices = @transform_3, window_bounds = array<i64: 64, 1>}, {pipeline_mode = #tpu.pipeline_mode<synchronous>, transform_indices = @transform_4, window_bounds = array<i64: 1, 1>}, {transform_indices = @transform_5, window_bounds = array<i64: 1, 128>}]} {
    %c0 = arith.constant 0 : index
    %c0_0 = arith.constant 0 : index
    %0 = vector.load %arg2[%c0, %c0_0] : memref<64x16xf32, #tpu.memory_space<vmem>>, vector<64x16xf32>
    %c0_1 = arith.constant 0 : index
    %c0_2 = arith.constant 0 : index
    %1 = vector.load %arg1[%c0_1, %c0_2] : memref<16x128xf32, #tpu.memory_space<vmem>>, vector<16x128xf32>
    %cst = arith.constant dense<0.000000e+00> : vector<64x128xf32>
    %2 = tpu.matmul %0, %1, %cst {dimension_numbers = #tpu.dot_dimension_numbers<[1], [0], [0], [1], [0, 0, 1, 1], [], []>} : vector<64x16xf32>, vector<16x128xf32>, vector<64x128xf32> -> vector<64x128xf32>
    %c0_3 = arith.constant 0 : index
    %c0_4 = arith.constant 0 : index
    %3 = vector.load %arg3[%c0_3, %c0_4] : memref<64x1xf32, #tpu.memory_space<vmem>>, vector<64x1xf32>
    %4 = vector.broadcast %3 : vector<64x1xf32> to vector<64x128xf32>
    %5 = arith.addf %2, %4 : vector<64x128xf32>
    %cst_5 = arith.constant 0.000000e+00 : f32
    %6 = vector.broadcast %cst_5 : f32 to vector<64x128xf32>
    %7 = arith.maximumf %5, %6 : vector<64x128xf32>
    %c0_6 = arith.constant 0 : index
    %c0_7 = arith.constant 0 : index
    %8 = vector.load %arg4[%c0_6, %c0_7] : memref<64x1xf32, #tpu.memory_space<vmem>>, vector<64x1xf32>
    %9 = vector.broadcast %8 : vector<64x1xf32> to vector<64x128xf32>
    %10 = arith.mulf %7, %9 : vector<64x128xf32>
    %cst_8 = arith.constant dense<0.000000e+00> : vector<128xf32>
    %11 = vector.multi_reduction <add>, %10, %cst_8 [0] : vector<64x128xf32> to vector<128xf32>
    %12 = vector.shape_cast %11 : vector<128xf32> to vector<1x128xf32>
    %c0_9 = arith.constant 0 : index
    %c0_10 = arith.constant 0 : index
    %13 = vector.load %arg5[%c0_9, %c0_10] : memref<1x1xf32, #tpu.memory_space<vmem>>, vector<1x1xf32>
    %14 = vector.broadcast %13 : vector<1x1xf32> to vector<1x128xf32>
    %15 = arith.addf %12, %14 : vector<1x128xf32>
    %c0_11 = arith.constant 0 : index
    %c0_12 = arith.constant 0 : index
    %16 = vector.load %arg6[%c0_11, %c0_12] : memref<1x128xf32, #tpu.memory_space<vmem>>, vector<1x128xf32>
    tpu.vector_store %arg6[%c0_11, %c0_12], %15 {strides = array<i32>} : memref<1x128xf32, #tpu.memory_space<vmem>>, vector<1x128xf32>,
    return
  }
  func.func @transform_0(%arg0: i32) -> (i32, i32) {
    %c0_i32 = arith.constant 0 : i32
    %c0_i32_0 = arith.constant 0 : i32
    return %c0_i32, %arg0 : i32, i32
  }
  func.func @transform_1(%arg0: i32) -> (i32, i32) {
    %c0_i32 = arith.constant 0 : i32
    %c0_i32_0 = arith.constant 0 : i32
    %c0_i32_1 = arith.constant 0 : i32
    return %c0_i32, %c0_i32_0 : i32, i32
  }
  func.func @transform_2(%arg0: i32) -> (i32, i32) {
    %c0_i32 = arith.constant 0 : i32
    %c0_i32_0 = arith.constant 0 : i32
    %c0_i32_1 = arith.constant 0 : i32
    return %c0_i32, %c0_i32_0 : i32, i32
  }
  func.func @transform_3(%arg0: i32) -> (i32, i32) {
    %c0_i32 = arith.constant 0 : i32
    %c0_i32_0 = arith.constant 0 : i32
    %c0_i32_1 = arith.constant 0 : i32
    return %c0_i32, %c0_i32_0 : i32, i32
  }
  func.func @transform_4(%arg0: i32) -> (i32, i32) {
    %c0_i32 = arith.constant 0 : i32
    %c0_i32_0 = arith.constant 0 : i32
    %c0_i32_1 = arith.constant 0 : i32
    return %c0_i32, %c0_i32_0 : i32, i32
  }
  func.func @transform_5(%arg0: i32) -> (i32, i32) {
    %c0_i32 = arith.constant 0 : i32
    %c0_i32_0 = arith.constant 0 : i32
    return %c0_i32, %arg0 : i32, i32
  }
}

</mosaic_0001>

<bundles_post_ra>
// kernel: tpu_custom_call.1
= control target key start
LH: loop header
LB: loop body
LE: loop exit
PB: predicated region body
PF: predicated region fallthrough
CT: control target
= control target key end

     0   :  { %s994_s0 = inlined_call_operand.vmem [shape: f32[16,256], index: 0, kind: input, shape index: {}]   ;;  %s995_s1 = inlined_call_operand.vmem [shape: f32[64,16], index: 1, kind: input, shape index: {}]   ;;  %s996_s2 = inlined_call_operand.vmem [shape: f32[64,1], index: 2, kind: input, shape index: {}]   ;;  %s997_s3 = inlined_call_operand.vmem [shape: f32[64,1], index: 3, kind: input, shape index: {}]   ;;  %s998_s4 = inlined_call_operand.<no memory space> [shape: f32[1,1], index: 4, kind: input, shape index: {}]   ;;  %s999_s5 = inlined_call_operand.hbm [shape: f32[1,256], index: 5, kind: output, shape index: {}]  }
   0x1   :  { %v10_v0 = vstv %s998_s4 }
   0x2   :  { %11 = vst [vmem:[#allocation2] sm:$0x1] %v10_v0 }
   0x3   :  { %12 = vsyncpa [#allocation5], 0 }
   0x4   :  { %14 = vsyncpa [#allocation5 + $0x1], 0  ;;  %s804_s20 = smov 0   ;;  %s806_s21 = smov 0  }
   0x5   :  { %s808_s22 = smov 0   ;;  %s810_s23 = smov 0  }
   0x6 LB: > { %s612_s4 = sadd.s32 4294967295, %s767_s23   ;;  %s613_s24 = sadd.s32 4294967294, %s767_s23   ;;  %s767_s23 = sphi %s810_s23, %s1005_s23   ;;  %s763_s22 = sphi %s808_s22, %s1004_s22   ;;  %s759_s21 = sphi %s806_s21, %s1003_s21   ;;  %s755_s20 = sphi %s804_s20, %s1002_s20  }
   0x7   : > { %s827_s25 = sadd.s32 1, %s767_s23   ;;  %s27_s26 = sadd.s32 1, %s763_s22 }
   0x8   : > { %s24_s27 = ssub.s32 %s767_s23, %s827_s25  ;;  %p34_p0 = scmp.ne.s32.totalorder %s763_s22, %s759_s21 }
   0x9   : > { %p25_p1 = scmp.eq.s32.totalorder %s24_s27, 0  ;;  %p35_p2 = scmp.eq.s32.totalorder %s767_s23, 0 }
   0xa   : > { %p148_p3 = scmp.eq.s32.totalorder %s612_s4, 1  ;;  %p153_p4 = scmp.ne.s32.totalorder %s759_s21, %s755_s20 }
   0xb   : > { %s840_s28 = scalar_select %p25_p1, %s763_s22, %s27_s26  }
   0xc   : > { %p36_p5 = por %p35_p2, %p34_p0  ;;  %p842_p6 = por %p148_p3, %p34_p0 }
   0xd   : > { %p154_p7 = scmp.eq.s32.totalorder %s613_s24, 1  ;;  %p615_p9 = scmp.ge.s32.totalorder %s767_s23, 2 }
   0xf   : > { %p846_p8 = por %p154_p7, %p153_p4  ;;  %182 = sbr.rel (%p615_p9) target bundleno = 29 (0x1d), region = 32 }
  0x16   : > { %185 = sbr.rel (!%p36_p5) target bundleno = 29 (0x1d), region = 36  ;;  %s187_s6 = sand.u32 (%p36_p5), 1, %s763_s22  }
  0x17   : > { %s617_s7 = sshll.u32 (%p36_p5), %s767_s23, 3  ;;  %s616_s8 = sshll.u32 (%p36_p5), %s187_s6, 4 }
  0x18   : > { %s191_s11 = scalar_lea.vmem (%p36_p5), %s994_s0, %s617_s7  ;;  %s189_s12 = scalar_lea.vmem (%p36_p5), [#allocation3], %s616_s8 }
  0x19   : > { %v221_v1 = vld [vmem:[%s191_s11] sm:$0xff] (%p36_p5)  ;;  %v223_v2 = vld [vmem:[%s191_s11 + $0x10] sm:$0xff] (%p36_p5) }
  0x1a   : > { %222 = vst [vmem:[%s189_s12] sm:$0xff] (%p36_p5), %v221_v1  ;;  %224 = vst [vmem:[%s189_s12 + $0x8] sm:$0xff] (%p36_p5), %v223_v2 }
  0x1d PF: > { %p618_p10 = scmp.ge.s32.totalorder %s767_s23, 1  ;;  %p229_p11 = scmp.lt.s32.totalorder %s767_s23, 3 }
  0x1f   : > { %p230_p12 = pnand %p618_p10, %p229_p11 }
  0x20   : > { %s861_s13 = sand.u32 (!%p230_p12), 1, %s759_s21   ;;  %v262_v3 = vld [vmem:[%s995_s1] sm:$0xff] (!%p230_p12)  ;;  %vm320_vm0 = vcmask (!%p230_p12), 130048   ;;  %v769_v5 = vmov (!%p230_p12), 0   ;;  %v274_v10 = vld [vmem:[%s996_s2 + $0x10] sm:$0xff] (!%p230_p12)  ;;  %v273_v11 = vld [vmem:[%s996_s2 + $0x8] sm:$0xff] (!%p230_p12) }
  0x21   : > { %233 = sbr.rel (%p230_p12) target bundleno = 305 (0x131), region = 74  ;;  %v266_v4 = vld [vmem:[%s995_s1 + $0x20] sm:$0xff] (!%p230_p12)  ;;  %s619_s18 = sshll.u32 (!%p230_p12), %s861_s13, 4  ;;  %645 = vmatprep.mubr.msk.f32.mxu0 (!%p230_p12), %vm320_vm0, %v262_v3  ;;  %703 = vset.pattern.permute.xlu0 (!%p230_p12), %v769_v5  ;;  %v275_v12 = vld [vmem:[%s996_s2 + $0x18] sm:$0xff] (!%p230_p12)  ;;  %v263_v13 = vld [vmem:[%s995_s1 + $0x8] sm:$0xff] (!%p230_p12) }
  0x22   : > { %651 = vmatprep.mubr.msk.f32.mxu1 (!%p230_p12), %vm320_vm0, %v266_v4  ;;  %v272_v6 = vld [vmem:[%s996_s2] sm:$0xff] (!%p230_p12)  ;;  %704 = vset.pattern.permute.xlu1 (!%p230_p12), %v769_v5  ;;  %s238_s26 = scalar_lea.vmem (!%p230_p12), [#allocation3], %s619_s18  ;;  %v267_v14 = vld [vmem:[%s995_s1 + $0x28] sm:$0xff] (!%p230_p12)  ;;  %v264_v15 = vld [vmem:[%s995_s1 + $0x10] sm:$0xff] (!%p230_p12)  ;;  %s628_s16 = sshll.u32 (!%p230_p12), %s612_s4, 4 }
  0x23   : > { %v270_v7 = vld [vmem:[%s238_s26] sm:$0xff] (!%p230_p12)  ;;  %v271_v8 = vld [vmem:[%s238_s26 + $0x8] sm:$0xff] (!%p230_p12)  ;;  %282 = vperm.xlu0 (!%p230_p12), %703, %v272_v6   ;;  %292 = vperm.xlu1 (!%p230_p12), %704, %v274_v10   ;;  %s261_s17 = scalar_lea.vmem (!%p230_p12), [#allocation4], %s861_s13  ;;  %s950_s26 = scalar_lea.hbm (!%p230_p12), %s999_s5, %s628_s16 }
  0x24   : > { %v657_v9 = vpack.c.bf16 (!%p230_p12), %v271_v8, %v270_v7  ;;  %v268_v16 = vld [vmem:[%s995_s1 + $0x30] sm:$0xff] (!%p230_p12)  ;;  %v458_v17 = vld [vmem:[%s997_s3] sm:$0xff] (!%p230_p12)  ;;  %v459_v18 = vld [vmem:[%s997_s3 + $0x8] sm:$0xff] (!%p230_p12)  ;;  %s552_s18 = sshll.u32 (!%p230_p12), %s261_s17, 4  ;;  %s540_s27 = scalar_lea.sflag (!%p230_p12), [#allocation5], %s861_s13  ;;  %s952_s18 = int_to_ptr.vmem [resolvable:$true] %s552_s18 }
  0x25   : > { %v265_v19 = vld [vmem:[%s995_s1 + $0x18] sm:$0xff] (!%p230_p12)  ;;  %v276_v21 = vld [vmem:[%s996_s2 + $0x20] sm:$0xff] (!%p230_p12)  ;;  %v460_v22 = vld [vmem:[%s997_s3 + $0x10] sm:$0xff] (!%p230_p12)  ;;  %s705_s6 = scalar_lea.vmem (!%p230_p12), %s952_s18, 16  ;;  %s770_s4 = smov (!%p230_p12), [#allocation4]  }
  0x26   : > { %658 = vmatprep.subr.bf16.mxu0 (!%p230_p12), %v657_v9  ;;  %661 = vmatprep.subr.bf16.mxu1 (!%p230_p12), %v657_v9  ;;  %v269_v20 = vld [vmem:[%s995_s1 + $0x38] sm:$0xff] (!%p230_p12)  ;;  %v277_v23 = vld [vmem:[%s996_s2 + $0x28] sm:$0xff] (!%p230_p12)  ;;  %v278_v25 = vld [vmem:[%s996_s2 + $0x30] sm:$0xff] (!%p230_p12)  ;;  %p706_p13 = scmp.ne.s32.totalorder (!%p230_p12), %s952_s18, %s705_s6  ;;  %s709_s7 = sshll.u32 (!%p230_p12), %s770_s4, 4  ;;  %s710_s7 = int_to_ptr.vmem [resolvable:$false] %s709_s7 }
  0x27   : > { %660 = vmatpush3.bf16.msra.mxu0 (!%p230_p12), %v657_v9  ;;  %662 = vmatpush3.bf16.msra.mxu1 (!%p230_p12), %v657_v9  ;;  %v461_v24 = vld [vmem:[%s997_s3 + $0x18] sm:$0xff] (!%p230_p12)  ;;  %v462_v26 = vld [vmem:[%s997_s3 + $0x20] sm:$0xff] (!%p230_p12)  ;;  %v463_v28 = vld [vmem:[%s997_s3 + $0x28] sm:$0xff] (!%p230_p12)  ;;  %s711_s8 = scalar_lea.vmem (!%p230_p12), %s710_s7, 32  ;;  %p712_p2 = scmp.lt.s32.totalorder (!%p230_p12), %s952_s18, %s710_s7 }
  0x28   : > { %287 = vperm.xlu0 %703, %v273_v11   ;;  %297 = vperm.xlu1 %704, %v275_v12   ;;  %v279_v27 = vld [vmem:[%s996_s2 + $0x38] sm:$0xff]  ;;  %v464_v29 = vld [vmem:[%s997_s3 + $0x30] sm:$0xff]  ;;  %v527_v31 = vld [vmem:[#allocation2] sm:$0x1]  ;;  %p707_p0 = pnand %p706_p13, %p842_p6  ;;  %p713_p3 = scmp.lt.s32.totalorder %s711_s8, %s705_s6 }
  0x29   : > { %v465_v30 = vld [vmem:[%s997_s3 + $0x38] sm:$0xff] }
  0x2a   : > { %646 = vmatmul.mubr.msk.f32.vlgmr.msra.gmra.mrb[0].mxu0 %vm320_vm0, %v263_v13  ;;  %652 = vmatmul.mubr.msk.f32.vlgmr.msra.gmra.mrb[0].mxu1 %vm320_vm0, %v267_v14  ;;  %p708_p1 = pneg %p707_p0  ;;  %p714_p4 = por %p713_p3, %p712_p2 }
  0x2b   : > { %648 = vmatprep.mubr.msk.f32.mxu0 %vm320_vm0, %v264_v15  ;;  %654 = vmatprep.mubr.msk.f32.mxu1 %vm320_vm0, %v268_v16 }
  0x2c   : > { %468 = vperm.xlu0 %703, %v458_v17   ;;  %473 = vperm.xlu1 %704, %v459_v18   ;;  %p715_p5 = pnand %p714_p4, %p708_p1 }
  0x2e   : > { %649 = vmatmul.mubr.msk.f32.gmra.mrb[2].mxu0 %vm320_vm0, %v265_v19  ;;  %655 = vmatmul.mubr.msk.f32.gmra.mrb[2].mxu1 %vm320_vm0, %v269_v20 }
  0x30   : > { %302 = vperm.xlu0 %703, %v276_v21   ;;  %478 = vperm.xlu1 %704, %v460_v22   ;;  %v533_v22 = vlaneseq }
  0x34   : > { %307 = vperm.xlu0 %703, %v277_v23   ;;  %483 = vperm.xlu1 %704, %v461_v24  }
  0x38   : > { %312 = vperm.xlu0 %703, %v278_v25   ;;  %488 = vperm.xlu1 %704, %v462_v26   ;;  %v534_v25 = vshrl.u32 %v533_v22, 7 }
  0x3c   : > { %317 = vperm.xlu0 %703, %v279_v27   ;;  %493 = vperm.xlu1 %704, %v463_v28   ;;  %v535_v28 = vsub.s32 0, %v534_v25 }
  0x40   : > { %498 = vperm.xlu0 %703, %v464_v29   ;;  %503 = vperm.xlu1 %704, %v465_v30  }
  0x44   : > { %530 = vperm.xlu0 %703, %v527_v31  }
  0xa2   : > { %v283_v32 = vpop.permute.xlu0 %282  ;;  %v293_v33 = vpop.permute.xlu1 %292 }
  0xa7   : > { %v288_v34 = vpop.permute.xlu0 %287  ;;  %v298_v35 = vpop.permute.xlu1 %297 }
  0xab   : > { %v469_v36 = vpop.permute.xlu0 %468  ;;  %v474_v37 = vpop.permute.xlu1 %473 }
  0xaf   : > { %v303_v38 = vpop.permute.xlu0 %302  ;;  %v479_v39 = vpop.permute.xlu1 %478 }
  0xb3   : > { %v308_v40 = vpop.permute.xlu0 %307  ;;  %v484_v41 = vpop.permute.xlu1 %483 }
  0xb7   : > { %v313_v48 = vpop.permute.xlu0 %312  ;;  %v489_v60 = vpop.permute.xlu1 %488 }
  0xbb   : > { %v318_v4 = vpop.permute.xlu0 %317  ;;  %v494_v9 = vpop.permute.xlu1 %493 }
  0xbf   : > { %v499_v16 = vpop.permute.xlu0 %498  ;;  %v504_v19 = vpop.permute.xlu1 %503 }
  0xc3   : > { %v531_v30 = vpop.permute.xlu0 %530 }
  0xfd   : > { %v647_v42 = vpop.f32.mrb[0].mxu0  ;;  %v653_v43 = vpop.f32.mrb[0].mxu1 }
  0xfe   : > { %v417_v44 = vadd.f32 %v647_v42, %v288_v34  ;;  %v411_v45 = vpop.f32.mrb[1].mxu0  ;;  %v431_v46 = vpop.f32.mrb[1].mxu1  ;;  %v437_v61 = vadd.f32 %v653_v43, %v308_v40 }
  0xff   : > { %v412_v47 = vadd.f32 %v411_v45, %v283_v32  ;;  %v432_v58 = vadd.f32 %v431_v46, %v303_v38  ;;  %v536_v32 = vrot.slane %v531_v30, %v535_v28 }
 0x100   : > { %v451_v49 = vmax.f32 %v417_v44, 0.0  ;;  %v455_v5 = vmax.f32 %v437_v61, 0.0 }
 0x101   : > { %v450_v50 = vmax.f32 %v412_v47, 0.0  ;;  %v650_v51 = vpop.f32.mrb[2].mxu0  ;;  %v656_v52 = vpop.f32.mrb[2].mxu1  ;;  %v454_v1 = vmax.f32 %v432_v58, 0.0 }
 0x102   : > { %v507_v53 = vmul.f32 %v474_v37, %v451_v49  ;;  %v427_v54 = vadd.f32 %v650_v51, %v298_v35  ;;  %v421_v55 = vpop.f32.mrb[3].mxu0  ;;  %v441_v56 = vpop.f32.mrb[3].mxu1  ;;  %v447_v7 = vadd.f32 %v656_v52, %v318_v4  ;;  %v511_v13 = vmul.f32 %v494_v9, %v455_v5 }
 0x103   : > { %v506_v57 = vmul.f32 %v469_v36, %v450_v50  ;;  %v422_v59 = vadd.f32 %v421_v55, %v293_v33  ;;  %v442_v3 = vadd.f32 %v441_v56, %v313_v48  ;;  %v510_v10 = vmul.f32 %v489_v60, %v454_v1 }
 0x104   : > { %v453_v63 = vmax.f32 %v427_v54, 0.0  ;;  %v457_v14 = vmax.f32 %v447_v7, 0.0 }
 0x105   : > { %v514_v62 = vadd.f32 %v507_v53, %v506_v57  ;;  %v452_v0 = vmax.f32 %v422_v59, 0.0  ;;  %v456_v12 = vmax.f32 %v442_v3, 0.0 }
 0x106   : > { %v509_v6 = vmul.f32 %v484_v41, %v453_v63  ;;  %v513_v20 = vmul.f32 %v504_v19, %v457_v14 }
 0x107   : > { %v508_v2 = vmul.f32 %v479_v39, %v452_v0  ;;  %v512_v17 = vmul.f32 %v499_v16, %v456_v12 }
 0x109   : > { %v515_v8 = vadd.f32 %v514_v62, %v508_v2 }
 0x10b   : > { %v516_v11 = vadd.f32 %v515_v8, %v509_v6 }
 0x10d   : > { %v517_v15 = vadd.f32 %v516_v11, %v510_v10 }
 0x10f   : > { %v518_v18 = vadd.f32 %v517_v15, %v511_v13 }
 0x111   : > { %v519_v21 = vadd.f32 %v518_v18, %v512_v17 }
 0x113   : > { %v520_v23 = vadd.f32 %v519_v21, %v513_v20 }
 0x115   : > { %v521_v24 = vrot.slane %v520_v23, 4 }
 0x117   : > { %v522_v26 = vadd.f32 %v521_v24, %v520_v23 }
 0x119   : > { %v523_v27 = vrot.slane %v522_v26, 2 }
 0x11b   : > { %v524_v29 = vadd.f32 %v523_v27, %v522_v26 }
 0x11d   : > { %v525_v31 = vrot.slane %v524_v29, 1 }
 0x11f   : > { %v526_v33 = vadd.f32 %v525_v31, %v524_v29 }
 0x121   : > { %v537_v34 = vadd.f32 %v536_v32, %v526_v33 }
 0x123   : > { %538 = vst [vmem:[%s261_s17] sm:$0x1] %v537_v34 }
 0x124   : > { %718 = shalt.err (!%p715_p5)
}
 0x125   : > { %s719_s13 = scalar_lea.hbm %s950_s26, 16  ;;  %s723_s11 = scalar_lea.hbm %s999_s5, 32 }
 0x126   : > { %p720_p7 = scmp.ne.s32.totalorder %s950_s26, %s719_s13  ;;  %p724_p12 = scmp.lt.u32.totalorder %s950_s26, %s999_s5 }
 0x127   : > { %p725_p13 = scmp.lt.u32.totalorder %s723_s11, %s719_s13  ;;  %p727_p1 = scmp.lt.u32.totalorder %s719_s13, %s950_s26 }
 0x128   : > { %p721_p10 = pnand %p720_p7, %p842_p6 }
 0x129   : > { %p726_p0 = por %p725_p13, %p724_p12 }
 0x12a   : > { %p722_p11 = pneg %p721_p10 }
 0x12b   : > { %p728_p2 = por %p727_p1, %p726_p0 }
 0x12d   : > { %p729_p3 = pnand %p728_p2, %p722_p11 }
 0x12f   : > { %732 = shalt.err (!%p729_p3)
}
 0x130   : > { %663 = dma.vmem_to_hbm [thread:$0]  (%p842_p6), %s952_s18, 16, %s950_s26, %s540_s27  }
 0x131 PF: > { %s564_s15 = sand.u32 1, %s755_s20   ;;  %p666_p4 = pnand %p615_p9, %p846_p8 }
 0x132   : > { %s565_s16 = scalar_lea.sflag [#allocation5], %s564_s15 }
 0x133   : > { %750 = dma.done.wait (!%p666_p4), %s565_s16, 16  }
 0x134   : > { %752 = vsyncadd (!%p666_p4), %s565_s16, 4294967280  ;;  %p17_p5 = scmp.ge.s32.totalorder %s827_s25, 4   ;;  %s1002_s20 = smov %s759_s21 }
 0x135   : > { %s1003_s21 = smov %s763_s22  ;;  %s1004_s22 = smov %s840_s28 }
 0x136   : > { %s1005_s23 = smov %s827_s25  ;;  %19 = sbr.rel (!%p17_p5) target bundleno = 6 (0x6), region = 118 }
 0x13d   :  { %569 = vsyncpa [#allocation5], 1 }
 0x13e   :  { %571 = vsyncpa [#allocation5 + $0x1], 1 }

</bundles_post_ra>
